<compile_context>
chip_gen: v7x
topology: tpu7x:2x2x1
jax: 0.10.0
libtpu: 0.0.40
codegen_flags: <defaults>
</compile_context>

<pallas_src>
import functools

import jax
import jax.numpy as jnp
import numpy as np
from jax.experimental import pallas as pl
from jax.experimental.pallas import tpu as pltpu


def _fused_ln_swish_gate_linear_kernel(
    x_ref, o_ref, nw_ref, w_ref, b_ref, out_ref, y_ref, *, eps
):
    # x_ref/o_ref: (tm, N); nw_ref: (1, N); w_ref: (td, N) (native (D, N) layout)
    # b_ref: (1, td); out_ref: (tm, td); y_ref: VMEM scratch (tm, N) matmul dtype
    j = pl.program_id(1)

    @pl.when(j == 0)
    def _():
        # LayerNorm + swish gate, computed once per row tile, fp32 stats.
        x = x_ref[...].astype(jnp.float32)
        o = o_ref[...].astype(jnp.float32)
        mean = jnp.mean(x, axis=-1, keepdims=True)
        xc = x - mean
        var = jnp.mean(xc * xc, axis=-1, keepdims=True)
        rstd = jax.lax.rsqrt(var + eps)
        y = xc * rstd * nw_ref[...].astype(jnp.float32)
        y = y * (o * jax.nn.sigmoid(o))
        y_ref[...] = y.astype(y_ref.dtype)

    # out[tile] = y @ W[tile].T + b[tile]   (contract last axes; fp32 accum)
    acc = jax.lax.dot_general(
        y_ref[...],
        w_ref[...],
        dimension_numbers=(((1,), (1,)), ((), ())),
        preferred_element_type=jnp.float32,
    )
    acc = acc + b_ref[...].astype(jnp.float32)
    out_ref[...] = acc.astype(out_ref.dtype)


def _round_up(a, b):
    return ((a + b - 1) // b) * b


def _select_tiles(M, N, D, in_itemsize, w_itemsize, out_itemsize,
                  sublane, row_tile_target, vmem_budget):
    """Pick (tm, td) that feed the MXU while fitting the VMEM budget."""
    tm = min(row_tile_target, _round_up(M, sublane))
    tm = _round_up(tm, sublane)

    if D <= 2048:
        td_cands = [D]  # full-extent block is always layout-legal
    else:
        td_cands = [c for c in (2048, 1024, 512, 256, 128) if D % c == 0] or [D]

    def est(tm_, td_):
        return (
            2 * 2 * tm_ * N * in_itemsize      # x + o tiles, double-buffered
            + 2 * td_ * N * w_itemsize         # weight tile, double-buffered
            + 2 * (N + td_) * 4                # norm weight + bias blocks
            + 2 * tm_ * td_ * out_itemsize     # output tile, double-buffered
            + tm_ * N * w_itemsize             # gated-activation scratch
            + 4 * tm_ * N * 4                  # in-kernel fp32 temporaries
        )

    td = td_cands[-1]
    for cand in td_cands:
        if est(tm, cand) <= vmem_budget:
            td = cand
            break
    while est(tm, td) > vmem_budget and tm > sublane:
        tm = max(sublane, _round_up(tm // 2, sublane))
    return tm, td, est(tm, td)


def fused_layer_norm_swish_gate_linear(
    x, o, norm_weight, linear_weight, linear_bias, *, eps=1e-5,
    row_tile=256, vmem_budget_bytes=48 * 1024 * 1024,
):
    """x, o: (..., N); linear_weight: (D_out, N); linear_bias: (D_out,)."""
    orig_shape = x.shape
    N = x.shape[-1]
    D = linear_weight.shape[0]
    assert linear_weight.shape == (D, N)

    x2 = x.reshape(-1, N)
    o2 = o.reshape(-1, N)
    M = x2.shape[0]

    nw = norm_weight.reshape(1, N)
    lb = linear_bias.reshape(1, D)

    in_itemsize = jnp.dtype(x.dtype).itemsize
    w_itemsize = jnp.dtype(linear_weight.dtype).itemsize
    out_dtype = x.dtype
    out_itemsize = jnp.dtype(out_dtype).itemsize
    # Sub-32-bit dtypes pack along sublanes: min sublane multiple 8/16/32.
    sublane = {4: 8, 2: 16, 1: 32}.get(in_itemsize, 8)

    tm, td, vmem_est = _select_tiles(
        M, N, D, in_itemsize, w_itemsize, out_itemsize,
        sublane, row_tile, vmem_budget_bytes)

    grid_m = pl.cdiv(M, tm)
    grid_d = pl.cdiv(D, td)

    kernel = functools.partial(_fused_ln_swish_gate_linear_kernel, eps=eps)

    cost = pl.CostEstimate(
        flops=2 * M * N * D,
        transcendentals=M * N,
        bytes_accessed=int(
            (x2.size + o2.size) * in_itemsize
            + linear_weight.size * w_itemsize
            + nw.size * jnp.dtype(nw.dtype).itemsize
            + lb.size * jnp.dtype(lb.dtype).itemsize
            + M * D * out_itemsize
        ),
    )

    vmem_limit = int(min(100 * 2**20, max(32 * 2**20, vmem_est + 8 * 2**20)))

    out = pl.pallas_call(
        kernel,
        out_shape=jax.ShapeDtypeStruct((M, D), out_dtype),
        grid_spec=pltpu.PrefetchScalarGridSpec(
            num_scalar_prefetch=0,
            grid=(grid_m, grid_d),
            in_specs=[
                pl.BlockSpec((tm, N), lambda i, j: (i, 0)),   # x row tile
                pl.BlockSpec((tm, N), lambda i, j: (i, 0)),   # o row tile
                pl.BlockSpec((1, N), lambda i, j: (0, 0)),    # norm weight
                pl.BlockSpec((td, N), lambda i, j: (j, 0)),   # W tile, (D, N)
                pl.BlockSpec((1, td), lambda i, j: (0, j)),   # bias tile
            ],
            out_specs=pl.BlockSpec((tm, td), lambda i, j: (i, j)),
            scratch_shapes=[pltpu.VMEM((tm, N), linear_weight.dtype)],
        ),
        compiler_params=pltpu.CompilerParams(
            dimension_semantics=("parallel", "arbitrary"),
            vmem_limit_bytes=vmem_limit,
        ),
        cost_estimate=cost,
    )(x2, o2, nw, linear_weight, lb)

    return out.reshape(orig_shape[:-1] + (D,))


def _reference(x, o, norm_weight, linear_weight, linear_bias, eps=1e-5):
    x32 = x.astype(jnp.float32)
    o32 = o.astype(jnp.float32)
    mean = jnp.mean(x32, axis=-1, keepdims=True)
    var = jnp.mean((x32 - mean) ** 2, axis=-1, keepdims=True)
    y = (x32 - mean) / jnp.sqrt(var + eps) * norm_weight
    y = y * o32 * jax.nn.sigmoid(o32)
    return (y @ linear_weight.T.astype(jnp.float32) + linear_bias).astype(x.dtype)


if __name__ == "__main__":
    # Small shapes consistent with the module: batch=2, seq=8, hidden=32.
    B, T, N = 2, 8, 32
    D_out = 32
    eps = 1e-5

    key = jax.random.PRNGKey(0)
    kx, ko, kw, kb = jax.random.split(key, 4)

    x = jax.random.normal(kx, (B, T, N), dtype=jnp.float32)
    o = jax.random.normal(ko, (B, T, N), dtype=jnp.float32)

    # Module parameters: norm weight = ones(hidden), no norm bias.
    norm_weight = jnp.ones((N,), dtype=jnp.float32)
    # Linear weight/bias passed into forward() — synthesized deterministically.
    linear_weight = jax.random.normal(kw, (D_out, N), dtype=jnp.float32) * 0.05
    linear_bias = jax.random.normal(kb, (D_out,), dtype=jnp.float32) * 0.05

    out = fused_layer_norm_swish_gate_linear(
        x, o, norm_weight, linear_weight, linear_bias, eps=eps
    )
    out = jax.block_until_ready(out)

    ref = _reference(x, o, norm_weight, linear_weight, linear_bias, eps=eps)
    np.testing.assert_allclose(np.asarray(out), np.asarray(ref), rtol=1e-5, atol=1e-5)

    print("KERNEL_OK")
</pallas_src>

<mosaic_0001>
module attributes {stable_mosaic.version = 11 : i64} {
  func.func @_fused_ln_swish_gate_linear_kernel(%arg0: i32, %arg1: i32, %arg2: memref<16x32xf32, #tpu.memory_space<vmem>>, %arg3: memref<16x32xf32, #tpu.memory_space<vmem>>, %arg4: memref<1x32xf32, #tpu.memory_space<vmem>>, %arg5: memref<32x32xf32, #tpu.memory_space<vmem>>, %arg6: memref<1x32xf32, #tpu.memory_space<vmem>>, %arg7: memref<16x32xf32, #tpu.memory_space<vmem>>, %arg8: memref<16x32xf32, #tpu.memory_space<vmem>>) attributes {dimension_semantics = [#tpu.dimension_semantics<parallel>, #tpu.dimension_semantics<arbitrary>], iteration_bounds = array<i64: 1, 1>, scalar_prefetch = 0 : i64, scratch_operands = 1 : i64, tpu.core_type = #tpu.core_type<tc>, window_params = [{transform_indices = @transform_0, window_bounds = array<i64: 16, 32>}, {transform_indices = @transform_1, window_bounds = array<i64: 16, 32>}, {pipeline_mode = #tpu.pipeline_mode<synchronous>, transform_indices = @transform_2, window_bounds = array<i64: 1, 32>}, {transform_indices = @transform_3, window_bounds = array<i64: 32, 32>}, {transform_indices = @transform_4, window_bounds = array<i64: 1, 32>}, {transform_indices = @transform_5, window_bounds = array<i64: 16, 32>}]} {
    %c0_i32 = arith.constant 0 : i32
    %0 = arith.cmpi eq, %arg1, %c0_i32 : i32
    %1 = arith.extui %0 : i1 to i32
    %c0_i32_0 = arith.constant 0 : i32
    %2 = arith.cmpi ne, %1, %c0_i32_0 : i32
    scf.if %2 {
      %c0_8 = arith.constant 0 : index
      %c0_9 = arith.constant 0 : index
      %10 = vector.load %arg2[%c0_8, %c0_9] : memref<16x32xf32, #tpu.memory_space<vmem>>, vector<16x32xf32>
      %c0_10 = arith.constant 0 : index
      %c0_11 = arith.constant 0 : index
      %11 = vector.load %arg3[%c0_10, %c0_11] : memref<16x32xf32, #tpu.memory_space<vmem>>, vector<16x32xf32>
      %cst_12 = arith.constant dense<0.000000e+00> : vector<16xf32>
      %12 = vector.multi_reduction <add>, %10, %cst_12 [1] : vector<16x32xf32> to vector<16xf32>
      %13 = vector.shape_cast %12 : vector<16xf32> to vector<16x1xf32>
      %cst_13 = arith.constant 3.200000e+01 : f32
      %14 = vector.broadcast %cst_13 : f32 to vector<16x1xf32>
      %15 = arith.divf %13, %14 : vector<16x1xf32>
      %16 = vector.broadcast %15 : vector<16x1xf32> to vector<16x32xf32>
      %17 = arith.subf %10, %16 : vector<16x32xf32>
      %18 = arith.mulf %17, %17 : vector<16x32xf32>
      %cst_14 = arith.constant dense<0.000000e+00> : vector<16xf32>
      %19 = vector.multi_reduction <add>, %18, %cst_14 [1] : vector<16x32xf32> to vector<16xf32>
      %20 = vector.shape_cast %19 : vector<16xf32> to vector<16x1xf32>
      %cst_15 = arith.constant 3.200000e+01 : f32
      %21 = vector.broadcast %cst_15 : f32 to vector<16x1xf32>
      %22 = arith.divf %20, %21 : vector<16x1xf32>
      %cst_16 = arith.constant 9.99999974E-6 : f32
      %23 = vector.broadcast %cst_16 : f32 to vector<16x1xf32>
      %24 = arith.addf %22, %23 : vector<16x1xf32>
      %25 = math.rsqrt %24 : vector<16x1xf32>
      %26 = vector.broadcast %25 : vector<16x1xf32> to vector<16x32xf32>
      %27 = arith.mulf %17, %26 : vector<16x32xf32>
      %c0_17 = arith.constant 0 : index
      %c0_18 = arith.constant 0 : index
      %28 = vector.load %arg4[%c0_17, %c0_18] : memref<1x32xf32, #tpu.memory_space<vmem>>, vector<1x32xf32>
      %29 = vector.broadcast %28 : vector<1x32xf32> to vector<16x32xf32>
      %30 = arith.mulf %27, %29 : vector<16x32xf32>
      %31 = arith.negf %11 : vector<16x32xf32>
      %32 = math.exp %31 : vector<16x32xf32>
      %cst_19 = arith.constant 1.000000e+00 : f32
      %33 = vector.broadcast %cst_19 : f32 to vector<16x32xf32>
      %34 = arith.addf %33, %32 : vector<16x32xf32>
      %35 = arith.divf %33, %34 : vector<16x32xf32>
      %36 = arith.mulf %11, %35 : vector<16x32xf32>
      %37 = arith.mulf %30, %36 : vector<16x32xf32>
      %c0_20 = arith.constant 0 : index
      %c0_21 = arith.constant 0 : index
      %38 = vector.load %arg8[%c0_20, %c0_21] : memref<16x32xf32, #tpu.memory_space<vmem>>, vector<16x32xf32>
      tpu.vector_store %arg8[%c0_20, %c0_21], %37 {strides = array<i32>} : memref<16x32xf32, #tpu.memory_space<vmem>>, vector<16x32xf32>,
    } else {
    }
    %c0 = arith.constant 0 : index
    %c0_1 = arith.constant 0 : index
    %3 = vector.load %arg8[%c0, %c0_1] : memref<16x32xf32, #tpu.memory_space<vmem>>, vector<16x32xf32>
    %c0_2 = arith.constant 0 : index
    %c0_3 = arith.constant 0 : index
    %4 = vector.load %arg5[%c0_2, %c0_3] : memref<32x32xf32, #tpu.memory_space<vmem>>, vector<32x32xf32>
    %cst = arith.constant dense<0.000000e+00> : vector<16x32xf32>
    %5 = tpu.matmul %3, %4, %cst {dimension_numbers = #tpu.dot_dimension_numbers<[1], [1], [0], [0], [0, 0, 1, 0], [], []>} : vector<16x32xf32>, vector<32x32xf32>, vector<16x32xf32> -> vector<16x32xf32>
    %c0_4 = arith.constant 0 : index
    %c0_5 = arith.constant 0 : index
    %6 = vector.load %arg6[%c0_4, %c0_5] : memref<1x32xf32, #tpu.memory_space<vmem>>, vector<1x32xf32>
    %7 = vector.broadcast %6 : vector<1x32xf32> to vector<16x32xf32>
    %8 = arith.addf %5, %7 : vector<16x32xf32>
    %c0_6 = arith.constant 0 : index
    %c0_7 = arith.constant 0 : index
    %9 = vector.load %arg7[%c0_6, %c0_7] : memref<16x32xf32, #tpu.memory_space<vmem>>, vector<16x32xf32>
    tpu.vector_store %arg7[%c0_6, %c0_7], %8 {strides = array<i32>} : memref<16x32xf32, #tpu.memory_space<vmem>>, vector<16x32xf32>,
    return
  }
  func.func @transform_0(%arg0: i32, %arg1: i32) -> (i32, i32) {
    %c0_i32 = arith.constant 0 : i32
    %c0_i32_0 = arith.constant 0 : i32
    return %arg0, %c0_i32 : i32, i32
  }
  func.func @transform_1(%arg0: i32, %arg1: i32) -> (i32, i32) {
    %c0_i32 = arith.constant 0 : i32
    %c0_i32_0 = arith.constant 0 : i32
    return %arg0, %c0_i32 : i32, i32
  }
  func.func @transform_2(%arg0: i32, %arg1: i32) -> (i32, i32) {
    %c0_i32 = arith.constant 0 : i32
    %c0_i32_0 = arith.constant 0 : i32
    %c0_i32_1 = arith.constant 0 : i32
    return %c0_i32, %c0_i32_0 : i32, i32
  }
  func.func @transform_3(%arg0: i32, %arg1: i32) -> (i32, i32) {
    %c0_i32 = arith.constant 0 : i32
    %c0_i32_0 = arith.constant 0 : i32
    return %arg1, %c0_i32 : i32, i32
  }
  func.func @transform_4(%arg0: i32, %arg1: i32) -> (i32, i32) {
    %c0_i32 = arith.constant 0 : i32
    %c0_i32_0 = arith.constant 0 : i32
    return %c0_i32, %arg1 : i32, i32
  }
  func.func @transform_5(%arg0: i32, %arg1: i32) -> (i32, i32) {
    %c0_i32 = arith.constant 0 : i32
    return %arg0, %arg1 : i32, i32
  }
}

</mosaic_0001>

<bundles_post_ra>
// kernel: tpu_custom_call.1
= control target key start
LH: loop header
LB: loop body
LE: loop exit
PB: predicated region body
PF: predicated region fallthrough
CT: control target
= control target key end

     0   :  { %10 = vsyncpa [#allocation4], 0  ;;  %s524_s0 = inlined_call_operand.hbm [shape: f32[16,32], index: 0, kind: input, shape index: {}]   ;;  %s525_s1 = inlined_call_operand.hbm [shape: f32[16,32], index: 1, kind: input, shape index: {}]   ;;  %s526_s2 = inlined_call_operand.vmem [shape: f32[1,32], index: 2, kind: input, shape index: {}]   ;;  %s527_s3 = inlined_call_operand.hbm [shape: f32[32,32], index: 3, kind: input, shape index: {}]   ;;  %s528_s4 = inlined_call_operand.vmem [shape: f32[1,32], index: 4, kind: input, shape index: {}]   ;;  %s529_s5 = inlined_call_operand.hbm [shape: f32[16,32], index: 5, kind: output, shape index: {}]  }
   0x1   :  { %11 = vsyncpa [#allocation7], 0 }
   0x2   :  { %12 = vsyncpa [#allocation5], 0  ;;  %s403_s18 = smov [#allocation6]   ;;  %s404_s20 = smov [#allocation3]  }
   0x3   :  { %s30_s19 = sshll.u32 %s403_s18, 4  ;;  %s18_s21 = sshll.u32 %s404_s20, 4  ;;  %s31_s19 = int_to_ptr.vmem [resolvable:$true] %s30_s19  ;;  %s439_s21 = int_to_ptr.vmem [resolvable:$true] %s18_s21 }
   0x4   :  { %s309_s24 = scalar_lea.hbm %s525_s1, 256 }
   0x5   :  { %p310_p0 = scmp.ne.s32.totalorder %s525_s1, %s309_s24  ;;  %p313_p1 = scmp.lt.u32.totalorder %s309_s24, %s525_s1 }
   0x7   :  { %p315_p2 = pnand %p313_p1, %p310_p0 }
   0x9   :  { %318 = shalt.err (!%p315_p2)
}
   0xa   :  { %s319_s29 = scalar_lea.vmem %s31_s19, 256  ;;  %p324_p4 = scmp.lt.s32.totalorder %s31_s19, %s31_s19 }
   0xb   :  { %p320_p3 = scmp.ne.s32.totalorder %s31_s19, %s319_s29  ;;  %p325_p5 = scmp.lt.s32.totalorder %s319_s29, %s319_s29 }
   0xd   :  { %p326_p6 = por %p325_p5, %p324_p4 }
   0xf   :  { %p327_p7 = pnand %p326_p6, %p320_p3 }
  0x11   :  { %330 = shalt.err (!%p327_p7)
}
  0x12   :  { %s405_s30 = smov 128   ;;  %s406_s6 = smov 8  }
  0x13   :  { %36 = dma.hbm_to_vmem [thread:$0]  %s525_s1, 256, %s31_s19, [#allocation7], %s405_s30, %s405_s30, %s406_s6  }
  0x14   :  { %s331_s11 = scalar_lea.hbm %s524_s0, 256 }
  0x15   :  { %p332_p8 = scmp.ne.s32.totalorder %s524_s0, %s331_s11  ;;  %p335_p9 = scmp.lt.u32.totalorder %s331_s11, %s524_s0 }
  0x17   :  { %p337_p10 = pnand %p335_p9, %p332_p8 }
  0x19   :  { %340 = shalt.err (!%p337_p10)
}
  0x1a   :  { %s341_s16 = scalar_lea.vmem %s439_s21, 256  ;;  %p346_p12 = scmp.lt.s32.totalorder %s439_s21, %s439_s21 }
  0x1b   :  { %p342_p11 = scmp.ne.s32.totalorder %s439_s21, %s341_s16  ;;  %p347_p13 = scmp.lt.s32.totalorder %s341_s16, %s341_s16 }
  0x1d   :  { %p348_p0 = por %p347_p13, %p346_p12 }
  0x1f   :  { %p349_p1 = pnand %p348_p0, %p342_p11 }
  0x21   :  { %352 = shalt.err (!%p349_p1)
}
  0x22   :  { %24 = dma.hbm_to_vmem [thread:$0]  %s524_s0, 256, %s439_s21, [#allocation4], %s405_s30, %s405_s30, %s406_s6  }
  0x23   :  { %s407_s18 = smov [#allocation8]   ;;  %s353_s23 = scalar_lea.hbm %s527_s3, 512 }
  0x24   :  { %s44_s19 = sshll.u32 %s407_s18, 4  ;;  %p354_p2 = scmp.ne.s32.totalorder %s527_s3, %s353_s23  ;;  %s45_s19 = int_to_ptr.vmem [resolvable:$true] %s44_s19 }
  0x25   :  { %p357_p3 = scmp.lt.u32.totalorder %s353_s23, %s527_s3 }
  0x27   :  { %p359_p4 = pnand %p357_p3, %p354_p2 }
  0x29   :  { %362 = shalt.err (!%p359_p4)
}
  0x2a   :  { %s363_s28 = scalar_lea.vmem %s45_s19, 512  ;;  %p368_p6 = scmp.lt.s32.totalorder %s45_s19, %s45_s19 }
  0x2b   :  { %p364_p5 = scmp.ne.s32.totalorder %s45_s19, %s363_s28  ;;  %p369_p7 = scmp.lt.s32.totalorder %s363_s28, %s363_s28 }
  0x2d   :  { %p370_p8 = por %p369_p7, %p368_p6 }
  0x2f   :  { %p371_p9 = pnand %p370_p8, %p364_p5 }
  0x31   :  { %374 = shalt.err (!%p371_p9)
}
  0x32   :  { %50 = dma.hbm_to_vmem [thread:$0]  %s527_s3, 512, %s45_s19, [#allocation7], %s405_s30, %s405_s30, %s406_s6  }
  0x33   :  { %397 = dma.done.wait [#allocation4], 256  }
  0x34   :  { %398 = vsyncadd [#allocation4], 4294967040 }
  0x35   :  { %399 = dma.done.wait [#allocation7], 768  }
  0x36   :  { %400 = vsyncadd [#allocation7], 4294966528  ;;  %vm70_vm0 = vcmask 261120   ;;  %v66_v0 = vld [vmem:[#allocation3] sm:$0xff]  ;;  %v67_v1 = vld [vmem:[#allocation3 + $0x8] sm:$0xff]  ;;  %s408_s8 = smov [#allocation9]  }
  0x37   :  { %v71_v2 = vsel %vm70_vm0, %v66_v0, 0.0  ;;  %v74_v3 = vsel %vm70_vm0, %v67_v1, 0.0  ;;  %v127_v14 = vld [vmem:[#allocation8] sm:$0xff]  ;;  %v128_v15 = vld [vmem:[#allocation8 + $0x8] sm:$0xff]  ;;  %vm280_vm1 = vmpackc.low %vm70_vm0, %vm70_vm0  ;;  %s239_s9 = sshll.u32 %s408_s8, 4  ;;  %s240_s9 = int_to_ptr.vmem [resolvable:$true] %s239_s9 }
  0x38   :  { %72 = vadd.xlane.f32.xlu0 %v71_v2  ;;  %v279_v16 = vpack.c.bf16 %v128_v15, %v127_v14  ;;  %v129_v17 = vld [vmem:[#allocation8 + $0x10] sm:$0xff]  ;;  %v130_v18 = vld [vmem:[#allocation8 + $0x18] sm:$0xff]  ;;  %s375_s10 = scalar_lea.vmem %s240_s9, 256  ;;  %p380_p11 = scmp.lt.s32.totalorder %s240_s9, %s240_s9 }
  0x39   :  { %v285_v19 = vpack.c.bf16 %v130_v18, %v129_v17  ;;  %v68_v20 = vld [vmem:[#allocation6] sm:$0xff]  ;;  %v69_v22 = vld [vmem:[#allocation6 + $0x8] sm:$0xff]  ;;  %p376_p10 = scmp.ne.s32.totalorder %s240_s9, %s375_s10  ;;  %p381_p12 = scmp.lt.s32.totalorder %s375_s10, %s375_s10 }
  0x3a   :  { %281 = vmatprep.subr.msk.bf16.mxu0 %vm280_vm1, %v279_v16  ;;  %v253_v21 = vmul.f32 -1.442695, %v68_v20  ;;  %v254_v23 = vmul.f32 -1.442695, %v69_v22  ;;  %v252_v36 = vld [vmem:[%s526_s2] ss:$0 sm:$0xff] }
  0x3b   :  { %284 = vmatpush3.bf16.xpose.msk.msra.mxu0 %vm280_vm1, %v279_v16  ;;  %v255_v49 = vld [vmem:[%s528_s4] ss:$0 sm:$0xff]  ;;  %p382_p13 = por %p381_p12, %p380_p11 }
  0x3c   :  { %75 = vadd.xlane.f32.xlu0 %v74_v3  ;;  %287 = vmatprep.subr.msk.bf16.mxu0 %vm280_vm1, %v285_v19  ;;  %297 = vpow2.f32 %v253_v21 }
  0x3d   :  { %299 = vpow2.f32 %v254_v23  ;;  %p383_p0 = pnand %p382_p13, %p376_p10 }
  0x43   :  { %290 = vmatpush3.bf16.xpose.msk.msra.mxu0 %vm280_vm1, %v285_v19 }
  0x46   :  { %v298_v24 = vpop.eup %297 }
  0x47   :  { %v113_v25 = vadd.f32 1.0, %v298_v24  ;;  %v300_v26 = vpop.eup %299 }
  0x48   :  { %v114_v30 = vadd.f32 1.0, %v300_v26 }
  0x49   :  { %301 = vrcp.f32 %v113_v25 }
  0x53   :  { %v302_v34 = vpop.eup %301 }
  0x54   :  { %v119_v37 = vmul.f32 %v302_v34, %v68_v20 }
  0xc5   :  { %v73_v4 = vpop.xlane.xlu0 %72 }
  0xc6   :  { %v78_v5 = vmul.f32 0.03125, %v73_v4 }
  0xc8   :  { %v80_v6 = vsub.f32 %v66_v0, %v78_v5 }
  0xc9   :  { %v76_v7 = vpop.xlane.xlu0 %75 }
  0xca   :  { %v79_v8 = vmul.f32 0.03125, %v76_v7  ;;  %v82_v9 = vmul.f32 %v80_v6, %v80_v6 }
  0xcc   :  { %v81_v10 = vsub.f32 %v67_v1, %v79_v8  ;;  %v84_v11 = vsel %vm70_vm0, %v82_v9, 0.0 }
  0xcd   :  { %85 = vadd.xlane.f32.xlu1 %v84_v11 }
  0xce   :  { %v83_v12 = vmul.f32 %v81_v10, %v81_v10 }
  0xd0   :  { %v87_v13 = vsel %vm70_vm0, %v83_v12, 0.0 }
  0xd1   :  { %88 = vadd.xlane.f32.xlu1 %v87_v13 }
 0x15a   :  { %v86_v27 = vpop.xlane.xlu1 %85 }
 0x15b   :  { %v90_v28 = vmul.f32 0.03125, %v86_v27 }
 0x15d   :  { %v92_v29 = vadd.f32 1e-05, %v90_v28 }
 0x15e   :  { %v89_v31 = vpop.xlane.xlu1 %88 }
 0x15f   :  { %303 = vrsqrt.f32 %v92_v29  ;;  %v91_v32 = vmul.f32 0.03125, %v89_v31 }
 0x160   :  { %305 = vrcp.f32 %v114_v30 }
 0x161   :  { %v93_v33 = vadd.f32 1e-05, %v91_v32 }
 0x163   :  { %307 = vrsqrt.f32 %v93_v33 }
 0x169   :  { %v304_v35 = vpop.eup %303 }
 0x16a   :  { %v96_v38 = vmul.f32 %v304_v35, %v80_v6  ;;  %v306_v39 = vpop.eup %305 }
 0x16b   :  { %v120_v43 = vmul.f32 %v306_v39, %v69_v22 }
 0x16c   :  { %v105_v40 = vmul.f32 %v252_v36, %v96_v38 }
 0x16d   :  { %v308_v41 = vpop.eup %307 }
 0x16e   :  { %v121_v42 = vmul.f32 %v119_v37, %v105_v40  ;;  %v97_v44 = vmul.f32 %v308_v41, %v81_v10 }
 0x170   :  { %123 = vst.msk [vmem:[#allocation2] sm:$0xff] %vm70_vm0, %v121_v42  ;;  %v106_v45 = vmul.f32 %v252_v36, %v97_v44 }
 0x172   :  { %v122_v46 = vmul.f32 %v120_v43, %v106_v45 }
 0x174   :  { %124 = vst.msk [vmem:[#allocation2 + $0x8] sm:$0xff] %vm70_vm0, %v122_v46 }
 0x177   :  { %v125_v47 = vld [vmem:[#allocation2] sm:$0xff] }
 0x178   :  { %276 = vmatprep.mubr.msk.f32.mxu0 %vm70_vm0, %v125_v47 }
 0x17b   :  { %v126_v48 = vld [vmem:[#allocation2 + $0x8] sm:$0xff] }
 0x17c   :  { %277 = vmatmul.mubr.msk.f32.vlgmr.msra.gmra.mrb[0].mxu0 %vm70_vm0, %v126_v48 }
 0x24f   :  { %v278_v50 = vpop.f32.mrb[0].mxu0 }
 0x250   :  { %v229_v51 = vadd.f32 %v278_v50, %v255_v49  ;;  %v223_v52 = vpop.f32.mrb[1].mxu0 }
 0x251   :  { %v224_v53 = vadd.f32 %v255_v49, %v223_v52 }
 0x252   :  { %233 = vst.msk [vmem:[#allocation9 + $0x8] sm:$0xff] %vm70_vm0, %v229_v51 }
 0x253   :  { %232 = vst.msk [vmem:[#allocation9] sm:$0xff] %vm70_vm0, %v224_v53 }
 0x254   :  { %386 = shalt.err (!%p383_p0)
}
 0x255   :  { %s387_s12 = scalar_lea.hbm %s529_s5, 256 }
 0x256   :  { %p388_p1 = scmp.ne.s32.totalorder %s529_s5, %s387_s12  ;;  %p391_p2 = scmp.lt.u32.totalorder %s387_s12, %s529_s5 }
 0x258   :  { %p393_p3 = pnand %p391_p2, %p388_p1 }
 0x25a   :  { %396 = shalt.err (!%p393_p3)
}
 0x25b   :  { %245 = dma.vmem_to_hbm [thread:$0]  %s240_s9, 256, %s529_s5, [#allocation5], %s405_s30, %s405_s30, %s406_s6  }
 0x25c   :  { %401 = dma.done.wait [#allocation5], 256  }
 0x25d   :  { %402 = vsyncadd [#allocation5], 4294967040 }
 0x25e   :  { %249 = vsyncpa [#allocation4], 1 }
 0x25f   :  { %250 = vsyncpa [#allocation7], 1 }
 0x260   :  { %251 = vsyncpa [#allocation5], 1 }

</bundles_post_ra>
